<compile_context>
chip_gen: v5e
topology: v5e:2x2
jax: 0.10.0
libtpu: 0.0.40
codegen_flags: <defaults>
</compile_context>

<pallas_src>
import jax
import jax.numpy as jnp
from jax.experimental import pallas as pl
from jax.experimental.pallas import tpu as pltpu

_MIB = 1024 * 1024


# ---------------------------------------------------------------------------
# Kernel
# ---------------------------------------------------------------------------
def _invconv_kernel(w_ref, x_ref, o_ref):
    """1x1 conv as per-pixel channel mixing on a lane-dense spatial tile.

    w_ref: (C, C)        weight[oc, ic] (grid-invariant, VMEM-resident)
    x_ref: (1, C, tHW)   input tile  (channels on sublanes, spatial on lanes)
    o_ref: (1, C, tHW)   output tile
    """
    o_ref[0] = jnp.dot(
        w_ref[...], x_ref[0], preferred_element_type=jnp.float32
    ).astype(o_ref.dtype)


# ---------------------------------------------------------------------------
# Weight reconstruction (hoisted out of the grid)
# ---------------------------------------------------------------------------
def _calc_weight(w_p, w_l, w_u, w_s_log, s_sign, volume_norm=True):
    C = w_p.shape[0]
    l_mask = jnp.tril(jnp.ones((C, C), jnp.float32), -1)
    u_mask = jnp.triu(jnp.ones((C, C), jnp.float32), 1)
    eye = jnp.eye(C, dtype=jnp.float32)
    ws = w_s_log - jnp.mean(w_s_log) if volume_norm else w_s_log
    diag = jnp.diag(s_sign * jnp.exp(ws))
    return w_p @ (w_l * l_mask + eye) @ (w_u * u_mask + diag)  # (C, C), weight[oc, ic]


# ---------------------------------------------------------------------------
# Tiling / VMEM accounting helpers
# ---------------------------------------------------------------------------
def _cdiv(a, b):
    return -(-a // b)


def _round_up(x, m):
    return _cdiv(x, m) * m


def _sublane_pack(itemsize):
    # f32 -> 8 sublanes per vreg row-group, bf16 -> 16, int8 -> 32
    return max(8, 32 // max(1, itemsize))


def _vmem_capacity_bytes():
    try:
        info = pltpu.get_tpu_info()
        cap = getattr(info, "vmem_capacity_bytes", None)
        if cap:
            return int(cap)
    except Exception:
        pass
    return 64 * _MIB  # conservative (v7x-sized) fallback


def _choose_spatial_tile(hw, c, itemsize, stream_budget_bytes):
    """Largest lane-dense tile (multiple of 128, <=8192 lanes) whose real
    streaming footprint (double-buffered input AND output, C padded to the
    sublane pack) fits the budget."""
    c_pad = _round_up(c, _sublane_pack(itemsize))
    bytes_per_col = 4 * c_pad * itemsize  # 2x in + 2x out buffers per column
    max_cols = max(128, stream_budget_bytes // bytes_per_col)
    thw = (max_cols // 128) * 128
    thw = max(128, min(thw, 8192))
    thw = min(thw, _round_up(hw, 128))  # never bigger than padded spatial extent
    return thw


# ---------------------------------------------------------------------------
# Wrapper
# ---------------------------------------------------------------------------
def invconv2dlu_forward(x, w_p, w_l, w_u, w_s_log, s_sign, *,
                        volume_norm=True, compute_dtype=None, spatial_tile=None):
    N, C, H, W = x.shape
    HW = H * W
    out_dtype = x.dtype

    # Hoisted, one-shot weight build (O(C^2) XLA work).
    weight = _calc_weight(w_p, w_l, w_u, w_s_log, s_sign, volume_norm).astype(jnp.float32)

    # Optional reduced-precision streaming (bandwidth-bound kernel): halves HBM
    # traffic on all generations. Default off to preserve f32 module semantics.
    if compute_dtype is not None:
        weight = weight.astype(compute_dtype)
        x = x.astype(compute_dtype)

    itemsize = jnp.dtype(x.dtype).itemsize
    w_itemsize = jnp.dtype(weight.dtype).itemsize

    # NCHW -> (N, C, H*W) is a free reshape (no transpose, no extra HBM traffic).
    x3d = x.reshape(N, C, HW)

    # Generation-aware VMEM budgets.
    phys_vmem = _vmem_capacity_bytes()
    if phys_vmem <= 64 * _MIB:        # v7x-class: 64 MiB VMEM / TC, 2 TCs / chip
        stream_budget = 32 * _MIB     # ~8 MiB per tile x (2 in + 2 out)
        vmem_cap = 56 * _MIB
        multi_core = True
    else:                             # v5e / v6e: 128 MiB VMEM, 1 TC
        stream_budget = 64 * _MIB     # ~16 MiB per tile x (2 in + 2 out)
        vmem_cap = 96 * _MIB
        multi_core = False

    if spatial_tile is not None:      # test hook / manual override
        thw = max(128, (int(spatial_tile) // 128) * 128)
    else:
        thw = _choose_spatial_tile(HW, C, itemsize, stream_budget)

    # On multi-TC parts make sure the grid has >= 2 steps so both cores get work.
    if multi_core:
        while N * _cdiv(HW, thw) < 2 and thw > 128:
            thw = max(128, ((thw // 2) // 128) * 128)

    grid = (N, _cdiv(HW, thw))        # ragged last block handled by Mosaic masking

    # Exact pipelined footprint: weight + 2x in tile + 2x out tile (+ margin).
    c_pad = _round_up(C, _sublane_pack(itemsize))
    tile_bytes = c_pad * thw * itemsize
    footprint = c_pad * c_pad * w_itemsize + 4 * tile_bytes
    vmem_limit = int(min(max(footprint + 4 * _MIB, 32 * _MIB), vmem_cap))

    cost = pl.CostEstimate(
        flops=2 * N * C * C * HW,
        bytes_accessed=(N * C * HW * itemsize                 # read x
                        + N * C * HW * jnp.dtype(out_dtype).itemsize  # write out
                        + C * C * w_itemsize),                 # read weight
        transcendentals=0,
    )

    out3d = pl.pallas_call(
        _invconv_kernel,
        out_shape=jax.ShapeDtypeStruct((N, C, HW), out_dtype),
        grid_spec=pltpu.PrefetchScalarGridSpec(
            num_scalar_prefetch=0,
            grid=grid,
            in_specs=[
                pl.BlockSpec((C, C), lambda n, s: (0, 0)),          # weight, resident
                pl.BlockSpec((1, C, thw), lambda n, s: (n, 0, s)),  # input tile
            ],
            out_specs=pl.BlockSpec((1, C, thw), lambda n, s: (n, 0, s)),
        ),
        compiler_params=pltpu.CompilerParams(
            dimension_semantics=("parallel", "parallel"),
            vmem_limit_bytes=vmem_limit,
        ),
        cost_estimate=cost,
    )(weight, x3d)

    return out3d.reshape(N, C, H, W)


# ---------------------------------------------------------------------------
# Reference + synthetic init
# ---------------------------------------------------------------------------
def _reference_forward(x, w_p, w_l, w_u, w_s_log, s_sign):
    """Plain-JAX reference mirroring the PyTorch module (volumeNorm=True)."""
    weight = _calc_weight(w_p, w_l, w_u, w_s_log, s_sign, volume_norm=True)
    return jnp.einsum("oc,nchw->nohw", weight, x)


def init_params(in_channel, key):
    """Deterministic synthetic init mirroring the module's __init__ (QR -> LU)."""
    w = jax.random.normal(key, (in_channel, in_channel), dtype=jnp.float32)
    q, _ = jnp.linalg.qr(w)
    p, l, u = jax.scipy.linalg.lu(q)
    w_s = jnp.diag(u)
    w_u = jnp.triu(u, 1)
    s_sign = jnp.sign(w_s)
    w_s_log = jnp.log(jnp.abs(w_s))
    return (p.astype(jnp.float32), l.astype(jnp.float32),
            w_u.astype(jnp.float32), w_s_log.astype(jnp.float32),
            s_sign.astype(jnp.float32))


if __name__ == "__main__":
    key = jax.random.PRNGKey(0)

    # Case 1: canonical small shape (single spatial tile per batch element).
    N, C, H, W = 2, 4, 16, 16
    k1, k2, kw = jax.random.split(key, 3)
    x = jax.random.normal(k1, (N, C, H, W), dtype=jnp.float32)
    w_p, w_l, w_u, w_s_log, s_sign = init_params(C, kw)
    out = jax.block_until_ready(invconv2dlu_forward(x, w_p, w_l, w_u, w_s_log, s_sign))
    ref = _reference_forward(x, w_p, w_l, w_u, w_s_log, s_sign)
    assert out.shape == (N, C, H, W)
    assert jnp.allclose(out, ref, atol=1e-4, rtol=1e-4), "case1 mismatch vs reference"

    # Case 2: non-128-divisible H*W with a forced small tile -> exercises the
    # multi-tile cdiv grid and the ragged (masked) last block.
    N2, C2, H2, W2 = 1, 8, 17, 19
    k3, kw2 = jax.random.split(k2)
    x2 = jax.random.normal(k3, (N2, C2, H2, W2), dtype=jnp.float32)
    p2 = init_params(C2, kw2)
    out2 = jax.block_until_ready(
        invconv2dlu_forward(x2, *p2, spatial_tile=128))
    ref2 = _reference_forward(x2, *p2)
    assert jnp.allclose(out2, ref2, atol=1e-4, rtol=1e-4), "case2 mismatch vs reference"

    # Case 3: non-128-divisible H*W on the default tile-chooser path
    # (single padded block, or split in two on multi-core parts).
    N3, C3, H3, W3 = 1, 4, 20, 20
    x3 = jax.random.normal(jax.random.PRNGKey(7), (N3, C3, H3, W3), dtype=jnp.float32)
    p3 = init_params(C3, jax.random.PRNGKey(11))
    out3 = jax.block_until_ready(invconv2dlu_forward(x3, *p3))
    ref3 = _reference_forward(x3, *p3)
    assert jnp.allclose(out3, ref3, atol=1e-4, rtol=1e-4), "case3 mismatch vs reference"

    print("KERNEL_OK")
</pallas_src>

<mosaic_0001>
module attributes {stable_mosaic.version = 11 : i64} {
  func.func @_invconv_kernel(%arg0: i32, %arg1: i32, %arg2: memref<4x4xf32, #tpu.memory_space<vmem>>, %arg3: memref<1x4x256xf32, #tpu.memory_space<vmem>>, %arg4: memref<1x4x256xf32, #tpu.memory_space<vmem>>) attributes {dimension_semantics = [#tpu.dimension_semantics<parallel>, #tpu.dimension_semantics<parallel>], iteration_bounds = array<i64: 2, 1>, scalar_prefetch = 0 : i64, scratch_operands = 0 : i64, tpu.core_type = #tpu.core_type<tc>, window_params = [{pipeline_mode = #tpu.pipeline_mode<synchronous>, transform_indices = @transform_0, window_bounds = array<i64: 4, 4>}, {transform_indices = @transform_1, window_bounds = array<i64: 1, 4, 256>}, {transform_indices = @transform_2, window_bounds = array<i64: 1, 4, 256>}]} {
    %c0 = arith.constant 0 : index
    %c0_0 = arith.constant 0 : index
    %0 = vector.load %arg2[%c0, %c0_0] : memref<4x4xf32, #tpu.memory_space<vmem>>, vector<4x4xf32>
    %c0_1 = arith.constant 0 : index
    %c0_2 = arith.constant 0 : index
    %c0_3 = arith.constant 0 : index
    %1 = vector.load %arg3[%c0_1, %c0_2, %c0_3] : memref<1x4x256xf32, #tpu.memory_space<vmem>>, vector<1x4x256xf32>
    %2 = vector.shape_cast %1 : vector<1x4x256xf32> to vector<4x256xf32>
    %cst = arith.constant dense<0.000000e+00> : vector<4x256xf32>
    %3 = tpu.matmul %0, %2, %cst {dimension_numbers = #tpu.dot_dimension_numbers<[1], [0], [0], [1], [0, 0, 1, 1], [], []>} : vector<4x4xf32>, vector<4x256xf32>, vector<4x256xf32> -> vector<4x256xf32>
    %c0_4 = arith.constant 0 : index
    %c0_5 = arith.constant 0 : index
    %c0_6 = arith.constant 0 : index
    %4 = vector.load %arg4[%c0_4, %c0_5, %c0_6] : memref<1x4x256xf32, #tpu.memory_space<vmem>>, vector<1x4x256xf32>
    %5 = vector.shape_cast %4 : vector<1x4x256xf32> to vector<4x256xf32>
    %6 = vector.shape_cast %3 : vector<4x256xf32> to vector<1x4x256xf32>
    tpu.vector_store %arg4[%c0_4, %c0_5, %c0_6], %6 {strides = array<i32>} : memref<1x4x256xf32, #tpu.memory_space<vmem>>, vector<1x4x256xf32>,
    return
  }
  func.func @transform_0(%arg0: i32, %arg1: i32) -> (i32, i32) {
    %c0_i32 = arith.constant 0 : i32
    %c0_i32_0 = arith.constant 0 : i32
    %c0_i32_1 = arith.constant 0 : i32
    return %c0_i32, %c0_i32_0 : i32, i32
  }
  func.func @transform_1(%arg0: i32, %arg1: i32) -> (i32, i32, i32) {
    %c0_i32 = arith.constant 0 : i32
    %c0_i32_0 = arith.constant 0 : i32
    return %arg0, %c0_i32, %arg1 : i32, i32, i32
  }
  func.func @transform_2(%arg0: i32, %arg1: i32) -> (i32, i32, i32) {
    %c0_i32 = arith.constant 0 : i32
    %c0_i32_0 = arith.constant 0 : i32
    return %arg0, %c0_i32, %arg1 : i32, i32, i32
  }
}

</mosaic_0001>

<bundles_post_ra>
// kernel: tpu_custom_call.1
= control target key start
LH: loop header
LB: loop body
LE: loop exit
PB: predicated region body
PF: predicated region fallthrough
CT: control target
= control target key end

     0   :  { %7 = vsyncpa [#allocation3], 0  ;;  %s785_s0 = inlined_call_operand.hbm [shape: f32[4,4], index: 0, kind: input, shape index: {}]   ;;  %s786_s1 = inlined_call_operand.hbm [shape: f32[2,4,256], index: 1, kind: input, shape index: {}]   ;;  %s787_s2 = inlined_call_operand.hbm [shape: f32[2,4,256], index: 2, kind: output, shape index: {}]  }
   0x1   :  { %8 = vsyncpa [#allocation6], 0 }
   0x2   :  { %10 = vsyncpa [#allocation6 + $0x1], 0 }
   0x3   :  { %11 = vsyncpa [#allocation4], 0 }
   0x4   :  { %13 = vsyncpa [#allocation4 + $0x1], 0  ;;  %s633_s9 = smov 0   ;;  %s635_s10 = smov 0  }
   0x5   :  { %s637_s11 = smov 0   ;;  %s639_s12 = smov 0  }
   0x6   :  { %s641_s13 = smov 0   ;;  %s643_s14 = smov 0  }
   0x7 LB: > { %s373_s15 = sadd.s32 4294967295, %s615_s14   ;;  %s374_s16 = sadd.s32 4294967294, %s615_s14   ;;  %s615_s14 = sphi %s643_s14, %s19_s14   ;;  %s611_s13 = sphi %s641_s13, %s799_s13   ;;  %s607_s12 = sphi %s639_s12, %s798_s12   ;;  %s603_s11 = sphi %s637_s11, %s797_s11   ;;  %s599_s10 = sphi %s635_s10, %s796_s10   ;;  %s595_s9 = sphi %s633_s9, %s795_s9  }
   0x8   : > { %p74_p0 = scmp.ne.s32.totalorder %s599_s10, %s595_s9  ;;  %p667_p1 = scmp.eq.s32.totalorder %s373_s15, 0 }
   0x9   : > { %p671_p2 = scmp.eq.s32.totalorder %s373_s15, 1  ;;  %p106_p3 = scmp.eq.s32.totalorder %s374_s16, 1 }
   0xa   : > { %p677_p4 = por %p667_p1, %p74_p0  ;;  %p375_p5 = scmp.ge.s32.totalorder %s615_s14, 1 }
   0xb   : > { %p682_p6 = por %p106_p3, %p74_p0  ;;  %p113_p7 = scmp.lt.s32.totalorder %s615_s14, 3 }
   0xc   : > { %s125_s23 = sshll.u32 %s785_s0, 4  ;;  %p377_p9 = scmp.ge.s32.totalorder %s615_s14, 2  ;;  %s126_s23 = int_to_ptr.hbm [resolvable:$true] %s125_s23 }
   0xd   : > { %p690_p8 = pnand %p375_p5, %p113_p7  ;;  %s617_s25 = smov [#allocation2]  }
   0xe   : > { %s127_s26 = sshll.u32 %s617_s25, 4  ;;  %s31_s27 = sadd.s32 1, %s611_s13  ;;  %s128_s26 = int_to_ptr.vmem [resolvable:$true] %s127_s26 }
   0xf   : > { %p404_p10 = pneg %p690_p8  ;;  %p33_p12 = scmp.ge.s32.totalorder %s31_s27, 2 }
  0x10   : > { %s61_s28 = sadd.s32 1, %s603_s11  ;;  %p68_p13 = scmp.ne.s32.totalorder %s603_s11, %s599_s10 }
  0x11   : > { %p405_p11 = pnand %p404_p10, %p667_p1  ;;  %p69_p0 = scmp.eq.s32.totalorder %s615_s14, 0 }
  0x12   : > { %s801_s27 = smov (%p33_p12, %s31_s27), 0  ;;  %p712_p5 = por %p671_p2, %p68_p13 }
  0x13   : > { %407 = dma.hbm_to_vmem [thread:$0]  (!%p405_p11), %s126_s23, 64, %s128_s26, [#allocation3]  }
  0x14   : > { %p706_p3 = por %p69_p0, %p68_p13  ;;  %s56_s3 = ssub.s32 %s611_s13, %s801_s27 }
  0x15   : > { %p417_p7 = scmp.lt.s32.totalorder %s615_s14, 2  ;;  %p59_p10 = scmp.eq.s32.totalorder %s56_s3, 0 }
  0x16   : > { %s138_s4 = sand.u32 1, %s603_s11   ;;  %s394_s7 = sshll.u32 %s611_s13, 3 }
  0x17   : > { %s378_s5 = sshll.u32 %s138_s4, 3  ;;  %s149_s16 = scalar_lea.hbm %s786_s1, %s394_s7 }
  0x18   : > { %s721_s6 = scalar_select %p59_p10, %s603_s11, %s61_s28  }
  0x19   : > { %s142_s21 = scalar_lea.vmem [#allocation5], %s378_s5  ;;  %s151_s18 = sshll.u32 %s149_s16, 4  ;;  %s152_s18 = int_to_ptr.hbm [resolvable:$true] %s151_s18 }
  0x1a   : > { %s153_s22 = sshll.u32 %s142_s21, 4  ;;  %p409_p2 = pnand %p417_p7, %p706_p3  ;;  %s154_s22 = int_to_ptr.vmem [resolvable:$true] %s153_s22 }
  0x1b   : > { %s139_s23 = scalar_lea.sflag [#allocation6], %s138_s4  ;;  %162 = sbr.rel (%p690_p8) target bundleno = 179 (0xb3), region = 28 }
  0x1c   : > { %411 = dma.hbm_to_vmem [thread:$0]  (!%p409_p2), %s152_s18, 128, %s154_s22, %s139_s23  }
  0x20   : > { %582 = dma.done.wait (%p667_p1), [#allocation3], 64  }
  0x21   : > { %584 = vsyncadd (%p667_p1), [#allocation3], 4294967232  ;;  %s736_s25 = sand.u32 1, %s599_s10  }
  0x22   : > { %s383_s26 = sshll.u32 %s736_s25, 3  ;;  %s170_s28 = scalar_lea.sflag [#allocation6], %s736_s25 }
  0x23   : > { %s173_s29 = scalar_lea.vmem [#allocation5], %s383_s26 }
  0x24   : > { %586 = dma.done.wait (%p677_p4), %s170_s28, 128  }
  0x25   : > { %588 = vsyncadd (%p677_p4), %s170_s28, 4294967168  ;;  %v198_v0 = vld [vmem:[%s173_s29] sm:$0xff]  ;;  %vm207_vm0 = vcmask 1043456   ;;  %v197_v1 = vld [vmem:[#allocation2] sm:$0xf]  ;;  %vm203_vm1 = vcmask 31744  }
  0x26   : > { %200 = vst [vmem:[#allocation1] ss:$2 sm:$0xff] %v198_v0  ;;  %s395_s17 = sshll.u32 %s607_s12, 3  ;;  %s194_s4 = scalar_lea.vmem [#allocation7], %s383_s26 }
  0x27   : > { %s272_s19 = scalar_lea.hbm %s787_s2, %s395_s17  ;;  %s274_s5 = sshll.u32 %s194_s4, 4  ;;  %s275_s5 = int_to_ptr.vmem [resolvable:$true] %s274_s5 }
  0x28   : > { %s276_s7 = sshll.u32 %s272_s19, 4  ;;  %s259_s8 = scalar_lea.sflag [#allocation4], %s736_s25  ;;  %s277_s7 = int_to_ptr.hbm [resolvable:$true] %s276_s7 }
  0x29   : > { %s543_s15 = sshra.s32 %s277_s7, 4  ;;  %s549_s22 = scalar_lea.hbm %s787_s2, 16  ;;  %s544_s15 = int_to_ptr.hbm [resolvable:$true] %s543_s15 }
  0x2a   : > { %s545_s12 = scalar_lea.hbm %s544_s15, 8  ;;  %p550_p11 = scmp.lt.s32.totalorder %s544_s15, %s787_s2 }
  0x2b   : > { %p546_p1 = scmp.ne.s32.totalorder %s544_s15, %s545_s12  ;;  %p551_p12 = scmp.lt.s32.totalorder %s549_s22, %s545_s12 }
  0x2d   : > { %v202_v2 = vld.sshfl [vmem:[#allocation1 + $0x8] sm:$0xff pattern:$0x75316420]  ;;  %v201_v3 = vld.sshfl [vmem:[#allocation1] sm:$0xff pattern:$0x75316420]  ;;  %p547_p4 = pnand %p546_p1, %p712_p5  ;;  %p552_p13 = por %p551_p12, %p550_p11 }
  0x2e   : > { %387 = vmatpush.msk.msra.mxu1 %vm207_vm0, %v202_v2  ;;  %385 = vmatpush.msk.msra.mxu0 %vm207_vm0, %v201_v3 }
  0x2f   : > { %388 = vmatmul.msk.f32.vlgmr.msra.gmra.mxu1 %vm203_vm1, %v197_v1  ;;  %386 = vmatmul.msk.f32.vlgmr.msra.gmra.mxu0 %vm203_vm1, %v197_v1  ;;  %p548_p8 = pneg %p547_p4 }
  0x31   : > { %p553_p0 = pnand %p552_p13, %p548_p8 }
  0xac   : > { %v249_v4 = vpop.f32.mrf.mxu1  ;;  %v229_v5 = vpop.f32.mrf.mxu0 }
  0xad   : > { %v254_v6 = vrot.slane %v249_v4, 4 }
  0xaf   : > { %v255_v7 = vsel %vm207_vm0, %v229_v5, %v254_v6 }
  0xb0   : > { %257 = vst [vmem:[%s194_s4] sm:$0xff] %v255_v7 }
  0xb1   : > { %556 = shalt.err (!%p553_p0)
}
  0xb2   : > { %402 = dma.vmem_to_hbm [thread:$0]  (%p712_p5), %s275_s5, 128, %s277_s7, %s259_s8  }
  0xb3 PF: > { %s288_s25 = sand.u32 1, %s595_s9   ;;  %p413_p3 = pnand %p377_p9, %p682_p6 }
  0xb4   : > { %s289_s26 = scalar_lea.sflag [#allocation4], %s288_s25 }
  0xb5   : > { %p414_p7 = pneg %p413_p3 }
  0xb7   : > { %590 = dma.done.wait (%p414_p7), %s289_s26, 128  }
  0xb8   : > { %592 = vsyncadd (%p414_p7), %s289_s26, 4294967168  ;;  %s19_s14 = sadd.s32 1, %s615_s14   ;;  %s795_s9 = smov %s599_s10 }
  0xb9   : > { %p16_p10 = scmp.ge.s32.totalorder %s19_s14, 4   ;;  %s796_s10 = smov %s603_s11 }
  0xba   : > { %s797_s11 = smov %s721_s6  ;;  %s798_s12 = smov %s611_s13 }
  0xbb   : > { %s799_s13 = smov %s801_s27  ;;  %18 = sbr.rel (!%p16_p10) target bundleno = 7 (0x7), region = 78 }
  0xc0   :  { %295 = vsyncpa [#allocation3], 1 }
  0xc1   :  { %297 = vsyncpa [#allocation3 + $0x1], 1 }
  0xc2   :  { %298 = vsyncpa [#allocation6], 1 }
  0xc3   :  { %300 = vsyncpa [#allocation6 + $0x1], 1 }
  0xc4   :  { %301 = vsyncpa [#allocation4], 1 }
  0xc5   :  { %303 = vsyncpa [#allocation4 + $0x1], 1 }

</bundles_post_ra>
